<compile_context>
chip_gen: v5e
topology: v5e:2x2
jax: 0.10.0
libtpu: 0.0.40
codegen_flags: <defaults>
</compile_context>

<pallas_src>
import functools

import jax
import jax.numpy as jnp
from jax import lax
from jax.experimental import pallas as pl
from jax.experimental.pallas import tpu as pltpu


def _fire_spread_kernel(use_fire_fuel, H, W, tbi,
                        w_ref, ign_ref, fires_ref, intensity_ref, *rest):
    if use_fire_fuel:
        fuel_ref, rand_ref, out_fires_ref, out_int_ref = rest
    else:
        fuel_ref = None
        rand_ref, out_fires_ref, out_int_ref = rest

    tw = tbi * W
    fires = fires_ref[0]          # (H, tw) int
    intensity = intensity_ref[0]  # (H, tw) int
    rand = rand_ref[0]            # (H, tw) float32
    ign = ign_ref[...]            # (H, tw) int (board-tiled ignition temps)

    # lit = (fires > 0) & (intensity > 0), as float32 conv input
    lit = jnp.logical_and(fires > 0, intensity > 0).astype(jnp.float32)

    rows = lax.broadcasted_iota(jnp.int32, (H, tw), 0)
    cols = lax.broadcasted_iota(jnp.int32, (H, tw), 1)
    # Board-local column (boards are packed side-by-side along the lane axis).
    if (W & (W - 1)) == 0:
        col_in_board = jnp.bitwise_and(cols, W - 1)
    else:
        col_in_board = cols % W

    # Hoisted boundary masks (computed once, reused for all taps).
    m_top = rows >= 1                 # a y-1 neighbour exists
    m_bot = rows <= H - 2             # a y+1 neighbour exists
    m_left = col_in_board >= 1        # an x-1 neighbour exists (same board)
    m_right = col_in_board <= W - 2   # an x+1 neighbour exists (same board)

    zero = jnp.zeros((H, tw), jnp.float32)

    # Row-shifted copies of lit (dy = -1, +1), row-masked once.
    r_m1 = jnp.where(m_top, pltpu.roll(lit, 1, 0), zero)      # lit[y-1, x]
    r_p1 = jnp.where(m_bot, pltpu.roll(lit, H - 1, 0), zero)  # lit[y+1, x]

    w = [w_ref[i] for i in range(9)]  # 3x3 conv weights, row-major, in SMEM

    # Separable column pass: combine rows per kernel column first (roll is
    # linear), then a single lane roll + mask per non-center column.
    src_l = w[0] * r_m1 + w[3] * lit + w[6] * r_p1   # kernel column kx=0 (dx=-1)
    src_c = w[1] * r_m1 + w[4] * lit + w[7] * r_p1   # kernel column kx=1 (dx= 0)
    src_r = w[2] * r_m1 + w[5] * lit + w[8] * r_p1   # kernel column kx=2 (dx=+1)

    p = src_c
    p = p + jnp.where(m_left, pltpu.roll(src_l, 1, 1), zero)        # src_l[y, x-1]
    p = p + jnp.where(m_right, pltpu.roll(src_r, tw - 1, 1), zero)  # src_r[y, x+1]

    # unlit tiles: fires < 0 and intensity == 0 (and fuel > 0 if enabled)
    unlit = jnp.logical_and(fires < 0, intensity == 0)
    if use_fire_fuel:
        unlit = jnp.logical_and(unlit, fuel_ref[0] > 0)

    p = jnp.where(unlit, p, 0.0)            # probabilities[~unlit] = 0
    spread = rand < p                       # fire_spread_mask

    out_fires_ref[0] = jnp.where(spread, -fires, fires)   # fires[mask] *= -1
    out_int_ref[0] = jnp.where(spread, ign, intensity)    # intensity[mask] = ignition_temps


def _choose_tbi(B, H, W, use_fire_fuel):
    """Pick how many boards share one grid step (lane-dense packing)."""
    LANE_TARGET = 512
    # VMEM budget for per-step slabs: (in + out) streams, double-buffered,
    # plus the resident ignition plane.  4 bytes/elem worst case.
    streams = (6 if use_fire_fuel else 5) + 2
    budget = 24 << 20
    max_tw = max(W, budget // ((2 * streams + 1) * H * 4))

    if B == 1 or W >= LANE_TARGET:
        tbi = 1
    else:
        tbi = min(B, max(1, LANE_TARGET // W), max(1, max_tw // W))

    # Keep >=2 grid steps (v7x megacore) only if each step stays lane-dense.
    if tbi >= B and B > 1:
        half = -(-B // 2)
        if half * W >= LANE_TARGET:
            tbi = half
    return max(1, tbi)


def fire_spread_transition(fires, intensity, fuel, randomness,
                           fire_spread_weights, ignition_temperatures,
                           use_fire_fuel):
    """Functional equivalent of FireSpreadTransition.forward.

    Returns (new_fires, new_intensity); other state fields are unchanged.
    """
    use_fire_fuel = bool(use_fire_fuel)
    B, H, W = fires.shape
    w9 = fire_spread_weights.reshape(9).astype(jnp.float32)

    # ---- lane-dense packing: how many boards share one grid step -----------
    tbi = _choose_tbi(B, H, W, use_fire_fuel)
    tbo = -(-B // tbi)
    b_pad = tbo * tbi
    tw = tbi * W

    def pad_b(x):
        if b_pad == B:
            return x
        # Zero padding is benign: fires==0 is neither lit nor unlit, so padded
        # boards never spread and never influence real boards (boards are
        # isolated by the board-local column masks).
        return jnp.pad(x, ((0, b_pad - B), (0, 0), (0, 0)))

    def pack(x):
        # (b_pad, H, W) -> (tbo, H, tbi*W): tbi boards side-by-side on lanes.
        return x.reshape(tbo, tbi, H, W).transpose(0, 2, 1, 3).reshape(tbo, H, tw)

    def unpack(x):
        return x.reshape(tbo, H, tbi, W).transpose(0, 2, 1, 3).reshape(b_pad, H, W)[:B]

    ign_packed = jnp.tile(ignition_temperatures.astype(intensity.dtype), (1, tbi))

    kernel = functools.partial(_fire_spread_kernel, use_fire_fuel, H, W, tbi)

    plane_spec = pl.BlockSpec((1, H, tw), lambda b: (b, 0, 0))

    in_specs = [
        pl.BlockSpec(memory_space=pltpu.MemorySpace.SMEM),  # conv weights (9,)
        pl.BlockSpec((H, tw), lambda b: (0, 0)),            # packed ignition temps
        plane_spec,                                         # fires
        plane_spec,                                         # intensity
    ]
    operands = [w9, ign_packed, pack(pad_b(fires)), pack(pad_b(intensity))]
    if use_fire_fuel:
        in_specs.append(plane_spec)                         # fuel
        operands.append(pack(pad_b(fuel)))
    in_specs.append(plane_spec)                             # randomness
    operands.append(pack(pad_b(randomness)))

    grid_spec = pltpu.PrefetchScalarGridSpec(
        num_scalar_prefetch=0,
        grid=(tbo,),
        in_specs=in_specs,
        out_specs=[
            plane_spec,                                     # new fires
            plane_spec,                                     # new intensity
        ],
    )

    # VMEM budget: input + output slabs, double-buffered, plus ignition plane.
    n_streams = (6 if use_fire_fuel else 5) + 2
    plane_bytes = H * tw * 4
    est = 2 * n_streams * plane_bytes + plane_bytes + (1 << 20)
    vmem_limit = int(min(48 * 1024 * 1024, max(32 * 1024 * 1024, 2 * est)))

    out_fires, out_intensity = pl.pallas_call(
        kernel,
        grid_spec=grid_spec,
        out_shape=(
            jax.ShapeDtypeStruct((tbo, H, tw), fires.dtype),
            jax.ShapeDtypeStruct((tbo, H, tw), intensity.dtype),
        ),
        compiler_params=pltpu.CompilerParams(
            dimension_semantics=("parallel",),
            vmem_limit_bytes=vmem_limit),
    )(*operands)

    return unpack(out_fires), unpack(out_intensity)


if __name__ == "__main__":
    key = jax.random.PRNGKey(0)
    B, H, W = 8, 16, 16
    k1, k2, k3, k4 = jax.random.split(key, 4)

    # Synthetic WildfireState fields (fires sign encodes lit/unlit).
    fires = jnp.where(jax.random.bernoulli(k1, 0.5, (B, H, W)), 1, -1).astype(jnp.int32)
    intensity = jax.random.randint(k2, (B, H, W), 0, 4, dtype=jnp.int32)
    fuel = jax.random.randint(k3, (B, H, W), 0, 3, dtype=jnp.int32)
    randomness_source = jax.random.uniform(k4, (B, H, W), dtype=jnp.float32)

    # Deterministic parameters (shapes match the module's __init__).
    fire_spread_weights = jnp.array(
        [[[[0.030, 0.060, 0.030],
           [0.060, 0.000, 0.060],
           [0.030, 0.060, 0.030]]]], dtype=jnp.float32)        # Conv2d(1,1,3) weight
    ignition_temperatures = jnp.full((H, W), 2, dtype=jnp.int32)
    use_fire_fuel = True

    new_fires, new_intensity = fire_spread_transition(
        fires, intensity, fuel, randomness_source,
        fire_spread_weights, ignition_temperatures, use_fire_fuel)
    jax.block_until_ready((new_fires, new_intensity))

    # Pure-JAX reference with the same separable arithmetic order as the kernel.
    w = fire_spread_weights.reshape(9)
    lit = jnp.logical_and(fires > 0, intensity > 0).astype(jnp.float32)
    zrow = jnp.zeros((B, 1, W), jnp.float32)
    r_m1 = jnp.concatenate([zrow, lit[:, :-1, :]], axis=1)   # lit[y-1, x]
    r_p1 = jnp.concatenate([lit[:, 1:, :], zrow], axis=1)    # lit[y+1, x]
    src_l = w[0] * r_m1 + w[3] * lit + w[6] * r_p1
    src_c = w[1] * r_m1 + w[4] * lit + w[7] * r_p1
    src_r = w[2] * r_m1 + w[5] * lit + w[8] * r_p1
    zcol = jnp.zeros((B, H, 1), jnp.float32)
    shift_l = jnp.concatenate([zcol, src_l[:, :, :-1]], axis=2)   # src_l[y, x-1]
    shift_r = jnp.concatenate([src_r[:, :, 1:], zcol], axis=2)    # src_r[y, x+1]
    p = src_c + shift_l + shift_r
    unlit = jnp.logical_and(fires < 0, intensity == 0)
    if use_fire_fuel:
        unlit = jnp.logical_and(unlit, fuel > 0)
    p = jnp.where(unlit, p, 0.0)
    mask = randomness_source < p
    ref_fires = jnp.where(mask, -fires, fires)
    ref_intensity = jnp.where(
        mask, jnp.broadcast_to(ignition_temperatures, (B, H, W)), intensity)

    assert jnp.array_equal(new_fires, ref_fires)
    assert jnp.array_equal(new_intensity, ref_intensity)
    print("KERNEL_OK")
</pallas_src>

<mosaic_0001>
module attributes {stable_mosaic.version = 11 : i64} {
  func.func @_fire_spread_kernel(%arg0: i32, %arg1: memref<9xf32, #tpu.memory_space<smem>>, %arg2: memref<16x128xi32, #tpu.memory_space<vmem>>, %arg3: memref<1x16x128xi32, #tpu.memory_space<vmem>>, %arg4: memref<1x16x128xi32, #tpu.memory_space<vmem>>, %arg5: memref<1x16x128xi32, #tpu.memory_space<vmem>>, %arg6: memref<1x16x128xf32, #tpu.memory_space<vmem>>, %arg7: memref<1x16x128xi32, #tpu.memory_space<vmem>>, %arg8: memref<1x16x128xi32, #tpu.memory_space<vmem>>) attributes {dimension_semantics = [#tpu.dimension_semantics<parallel>], iteration_bounds = array<i64: 1>, scalar_prefetch = 0 : i64, scratch_operands = 0 : i64, tpu.core_type = #tpu.core_type<tc>, window_params = [{transform_indices = @transform_0, window_bounds = array<i64: 9>}, {pipeline_mode = #tpu.pipeline_mode<synchronous>, transform_indices = @transform_1, window_bounds = array<i64: 16, 128>}, {transform_indices = @transform_2, window_bounds = array<i64: 1, 16, 128>}, {transform_indices = @transform_3, window_bounds = array<i64: 1, 16, 128>}, {transform_indices = @transform_4, window_bounds = array<i64: 1, 16, 128>}, {transform_indices = @transform_5, window_bounds = array<i64: 1, 16, 128>}, {transform_indices = @transform_6, window_bounds = array<i64: 1, 16, 128>}, {transform_indices = @transform_7, window_bounds = array<i64: 1, 16, 128>}]} {
    %c0 = arith.constant 0 : index
    %c0_0 = arith.constant 0 : index
    %c0_1 = arith.constant 0 : index
    %0 = vector.load %arg3[%c0, %c0_0, %c0_1] : memref<1x16x128xi32, #tpu.memory_space<vmem>>, vector<1x16x128xi32>
    %1 = vector.shape_cast %0 : vector<1x16x128xi32> to vector<16x128xi32>
    %c0_2 = arith.constant 0 : index
    %c0_3 = arith.constant 0 : index
    %c0_4 = arith.constant 0 : index
    %2 = vector.load %arg4[%c0_2, %c0_3, %c0_4] : memref<1x16x128xi32, #tpu.memory_space<vmem>>, vector<1x16x128xi32>
    %3 = vector.shape_cast %2 : vector<1x16x128xi32> to vector<16x128xi32>
    %c0_5 = arith.constant 0 : index
    %c0_6 = arith.constant 0 : index
    %c0_7 = arith.constant 0 : index
    %4 = vector.load %arg6[%c0_5, %c0_6, %c0_7] : memref<1x16x128xf32, #tpu.memory_space<vmem>>, vector<1x16x128xf32>
    %5 = vector.shape_cast %4 : vector<1x16x128xf32> to vector<16x128xf32>
    %c0_8 = arith.constant 0 : index
    %c0_9 = arith.constant 0 : index
    %6 = vector.load %arg2[%c0_8, %c0_9] : memref<16x128xi32, #tpu.memory_space<vmem>>, vector<16x128xi32>
    %c0_i32 = arith.constant 0 : i32
    %7 = vector.broadcast %c0_i32 : i32 to vector<16x128xi32>
    %8 = arith.cmpi sgt, %1, %7 : vector<16x128xi32>
    %c0_i32_10 = arith.constant 0 : i32
    %9 = vector.broadcast %c0_i32_10 : i32 to vector<16x128xi32>
    %10 = arith.cmpi sgt, %3, %9 : vector<16x128xi32>
    %11 = arith.andi %8, %10 : vector<16x128xi1>
    %12 = arith.extui %11 : vector<16x128xi1> to vector<16x128xi32>
    %13 = arith.sitofp %12 : vector<16x128xi32> to vector<16x128xf32>
    %14 = tpu.iota {dimensions = array<i32: 0>} : vector<16x128xi32>
    %15 = tpu.iota {dimensions = array<i32: 1>} : vector<16x128xi32>
    %c15_i32 = arith.constant 15 : i32
    %16 = vector.broadcast %c15_i32 : i32 to vector<16x128xi32>
    %17 = arith.andi %15, %16 : vector<16x128xi32>
    %c1_i32 = arith.constant 1 : i32
    %18 = vector.broadcast %c1_i32 : i32 to vector<16x128xi32>
    %19 = arith.cmpi sge, %14, %18 : vector<16x128xi32>
    %c14_i32 = arith.constant 14 : i32
    %20 = vector.broadcast %c14_i32 : i32 to vector<16x128xi32>
    %21 = arith.cmpi sle, %14, %20 : vector<16x128xi32>
    %c1_i32_11 = arith.constant 1 : i32
    %22 = vector.broadcast %c1_i32_11 : i32 to vector<16x128xi32>
    %23 = arith.cmpi sge, %17, %22 : vector<16x128xi32>
    %c14_i32_12 = arith.constant 14 : i32
    %24 = vector.broadcast %c14_i32_12 : i32 to vector<16x128xi32>
    %25 = arith.cmpi sle, %17, %24 : vector<16x128xi32>
    %cst = arith.constant 0.000000e+00 : f32
    %26 = vector.broadcast %cst : f32 to vector<16x128xf32>
    %c1_i32_13 = arith.constant 1 : i32
    %27 = tpu.dynamic_rotate %13 by %c1_i32_13 dim 0 : vector<16x128xf32>, i32 -> vector<16x128xf32>
    %28 = arith.select %19, %27, %26 : vector<16x128xi1>, vector<16x128xf32>
    %c15_i32_14 = arith.constant 15 : i32
    %29 = tpu.dynamic_rotate %13 by %c15_i32_14 dim 0 : vector<16x128xf32>, i32 -> vector<16x128xf32>
    %30 = arith.select %21, %29, %26 : vector<16x128xi1>, vector<16x128xf32>
    %c0_15 = arith.constant 0 : index
    %31 = memref.load %arg1[%c0_15] : memref<9xf32, #tpu.memory_space<smem>>
    %c1 = arith.constant 1 : index
    %32 = memref.load %arg1[%c1] : memref<9xf32, #tpu.memory_space<smem>>
    %c2 = arith.constant 2 : index
    %33 = memref.load %arg1[%c2] : memref<9xf32, #tpu.memory_space<smem>>
    %c3 = arith.constant 3 : index
    %34 = memref.load %arg1[%c3] : memref<9xf32, #tpu.memory_space<smem>>
    %c4 = arith.constant 4 : index
    %35 = memref.load %arg1[%c4] : memref<9xf32, #tpu.memory_space<smem>>
    %c5 = arith.constant 5 : index
    %36 = memref.load %arg1[%c5] : memref<9xf32, #tpu.memory_space<smem>>
    %c6 = arith.constant 6 : index
    %37 = memref.load %arg1[%c6] : memref<9xf32, #tpu.memory_space<smem>>
    %c7 = arith.constant 7 : index
    %38 = memref.load %arg1[%c7] : memref<9xf32, #tpu.memory_space<smem>>
    %c8 = arith.constant 8 : index
    %39 = memref.load %arg1[%c8] : memref<9xf32, #tpu.memory_space<smem>>
    %40 = vector.broadcast %31 : f32 to vector<16x128xf32>
    %41 = arith.mulf %40, %28 : vector<16x128xf32>
    %42 = vector.broadcast %34 : f32 to vector<16x128xf32>
    %43 = arith.mulf %42, %13 : vector<16x128xf32>
    %44 = arith.addf %41, %43 : vector<16x128xf32>
    %45 = vector.broadcast %37 : f32 to vector<16x128xf32>
    %46 = arith.mulf %45, %30 : vector<16x128xf32>
    %47 = arith.addf %44, %46 : vector<16x128xf32>
    %48 = vector.broadcast %32 : f32 to vector<16x128xf32>
    %49 = arith.mulf %48, %28 : vector<16x128xf32>
    %50 = vector.broadcast %35 : f32 to vector<16x128xf32>
    %51 = arith.mulf %50, %13 : vector<16x128xf32>
    %52 = arith.addf %49, %51 : vector<16x128xf32>
    %53 = vector.broadcast %38 : f32 to vector<16x128xf32>
    %54 = arith.mulf %53, %30 : vector<16x128xf32>
    %55 = arith.addf %52, %54 : vector<16x128xf32>
    %56 = vector.broadcast %33 : f32 to vector<16x128xf32>
    %57 = arith.mulf %56, %28 : vector<16x128xf32>
    %58 = vector.broadcast %36 : f32 to vector<16x128xf32>
    %59 = arith.mulf %58, %13 : vector<16x128xf32>
    %60 = arith.addf %57, %59 : vector<16x128xf32>
    %61 = vector.broadcast %39 : f32 to vector<16x128xf32>
    %62 = arith.mulf %61, %30 : vector<16x128xf32>
    %63 = arith.addf %60, %62 : vector<16x128xf32>
    %c1_i32_16 = arith.constant 1 : i32
    %64 = tpu.dynamic_rotate %47 by %c1_i32_16 dim 1 : vector<16x128xf32>, i32 -> vector<16x128xf32>
    %65 = arith.select %23, %64, %26 : vector<16x128xi1>, vector<16x128xf32>
    %66 = arith.addf %55, %65 : vector<16x128xf32>
    %c127_i32 = arith.constant 127 : i32
    %67 = tpu.dynamic_rotate %63 by %c127_i32 dim 1 : vector<16x128xf32>, i32 -> vector<16x128xf32>
    %68 = arith.select %25, %67, %26 : vector<16x128xi1>, vector<16x128xf32>
    %69 = arith.addf %66, %68 : vector<16x128xf32>
    %c0_i32_17 = arith.constant 0 : i32
    %70 = vector.broadcast %c0_i32_17 : i32 to vector<16x128xi32>
    %71 = arith.cmpi slt, %1, %70 : vector<16x128xi32>
    %c0_i32_18 = arith.constant 0 : i32
    %72 = vector.broadcast %c0_i32_18 : i32 to vector<16x128xi32>
    %73 = arith.cmpi eq, %3, %72 : vector<16x128xi32>
    %74 = arith.andi %71, %73 : vector<16x128xi1>
    %c0_19 = arith.constant 0 : index
    %c0_20 = arith.constant 0 : index
    %c0_21 = arith.constant 0 : index
    %75 = vector.load %arg5[%c0_19, %c0_20, %c0_21] : memref<1x16x128xi32, #tpu.memory_space<vmem>>, vector<1x16x128xi32>
    %76 = vector.shape_cast %75 : vector<1x16x128xi32> to vector<16x128xi32>
    %c0_i32_22 = arith.constant 0 : i32
    %77 = vector.broadcast %c0_i32_22 : i32 to vector<16x128xi32>
    %78 = arith.cmpi sgt, %76, %77 : vector<16x128xi32>
    %79 = arith.andi %74, %78 : vector<16x128xi1>
    %cst_23 = arith.constant 0.000000e+00 : f32
    %80 = vector.broadcast %cst_23 : f32 to vector<16x128xf32>
    %81 = arith.select %79, %69, %80 : vector<16x128xi1>, vector<16x128xf32>
    %82 = arith.cmpf olt, %5, %81 : vector<16x128xf32>
    %c0_i32_24 = arith.constant 0 : i32
    %83 = vector.broadcast %c0_i32_24 : i32 to vector<16x128xi32>
    %84 = arith.subi %83, %1 : vector<16x128xi32>
    %85 = arith.select %82, %84, %1 : vector<16x128xi1>, vector<16x128xi32>
    %c0_25 = arith.constant 0 : index
    %c0_26 = arith.constant 0 : index
    %c0_27 = arith.constant 0 : index
    %86 = vector.load %arg7[%c0_25, %c0_26, %c0_27] : memref<1x16x128xi32, #tpu.memory_space<vmem>>, vector<1x16x128xi32>
    %87 = vector.shape_cast %86 : vector<1x16x128xi32> to vector<16x128xi32>
    %88 = vector.shape_cast %85 : vector<16x128xi32> to vector<1x16x128xi32>
    tpu.vector_store %arg7[%c0_25, %c0_26, %c0_27], %88 {strides = array<i32>} : memref<1x16x128xi32, #tpu.memory_space<vmem>>, vector<1x16x128xi32>,
    %89 = arith.select %82, %6, %3 : vector<16x128xi1>, vector<16x128xi32>
    %c0_28 = arith.constant 0 : index
    %c0_29 = arith.constant 0 : index
    %c0_30 = arith.constant 0 : index
    %90 = vector.load %arg8[%c0_28, %c0_29, %c0_30] : memref<1x16x128xi32, #tpu.memory_space<vmem>>, vector<1x16x128xi32>
    %91 = vector.shape_cast %90 : vector<1x16x128xi32> to vector<16x128xi32>
    %92 = vector.shape_cast %89 : vector<16x128xi32> to vector<1x16x128xi32>
    tpu.vector_store %arg8[%c0_28, %c0_29, %c0_30], %92 {strides = array<i32>} : memref<1x16x128xi32, #tpu.memory_space<vmem>>, vector<1x16x128xi32>,
    return
  }
  func.func @transform_0(%arg0: i32) -> i32 {
    %c0_i32 = arith.constant 0 : i32
    %c0_i32_0 = arith.constant 0 : i32
    return %c0_i32 : i32
  }
  func.func @transform_1(%arg0: i32) -> (i32, i32) {
    %c0_i32 = arith.constant 0 : i32
    %c0_i32_0 = arith.constant 0 : i32
    %c0_i32_1 = arith.constant 0 : i32
    return %c0_i32, %c0_i32_0 : i32, i32
  }
  func.func @transform_2(%arg0: i32) -> (i32, i32, i32) {
    %c0_i32 = arith.constant 0 : i32
    %c0_i32_0 = arith.constant 0 : i32
    %c0_i32_1 = arith.constant 0 : i32
    return %arg0, %c0_i32, %c0_i32_0 : i32, i32, i32
  }
  func.func @transform_3(%arg0: i32) -> (i32, i32, i32) {
    %c0_i32 = arith.constant 0 : i32
    %c0_i32_0 = arith.constant 0 : i32
    %c0_i32_1 = arith.constant 0 : i32
    return %arg0, %c0_i32, %c0_i32_0 : i32, i32, i32
  }
  func.func @transform_4(%arg0: i32) -> (i32, i32, i32) {
    %c0_i32 = arith.constant 0 : i32
    %c0_i32_0 = arith.constant 0 : i32
    %c0_i32_1 = arith.constant 0 : i32
    return %arg0, %c0_i32, %c0_i32_0 : i32, i32, i32
  }
  func.func @transform_5(%arg0: i32) -> (i32, i32, i32) {
    %c0_i32 = arith.constant 0 : i32
    %c0_i32_0 = arith.constant 0 : i32
    %c0_i32_1 = arith.constant 0 : i32
    return %arg0, %c0_i32, %c0_i32_0 : i32, i32, i32
  }
  func.func @transform_6(%arg0: i32) -> (i32, i32, i32) {
    %c0_i32 = arith.constant 0 : i32
    %c0_i32_0 = arith.constant 0 : i32
    %c0_i32_1 = arith.constant 0 : i32
    return %arg0, %c0_i32, %c0_i32_0 : i32, i32, i32
  }
  func.func @transform_7(%arg0: i32) -> (i32, i32, i32) {
    %c0_i32 = arith.constant 0 : i32
    %c0_i32_0 = arith.constant 0 : i32
    %c0_i32_1 = arith.constant 0 : i32
    return %arg0, %c0_i32, %c0_i32_0 : i32, i32, i32
  }
}

</mosaic_0001>

<bundles_post_ra>
// kernel: tpu_custom_call.1
= control target key start
LH: loop header
LB: loop body
LE: loop exit
PB: predicated region body
PF: predicated region fallthrough
CT: control target
= control target key end

     0   :  { %13 = vsyncpa [#allocation5], 0  ;;  %s683_s0 = inlined_call_operand.hbm [shape: f32[9], index: 0, kind: input, shape index: {}]   ;;  %s684_s1 = inlined_call_operand.hbm [shape: s32[16,128], index: 1, kind: input, shape index: {}]   ;;  %s685_s2 = inlined_call_operand.hbm [shape: s32[1,16,128], index: 2, kind: input, shape index: {}]   ;;  %s686_s3 = inlined_call_operand.hbm [shape: s32[1,16,128], index: 3, kind: input, shape index: {}]   ;;  %s687_s4 = inlined_call_operand.hbm [shape: s32[1,16,128], index: 4, kind: input, shape index: {}]   ;;  %s688_s5 = inlined_call_operand.hbm [shape: f32[1,16,128], index: 5, kind: input, shape index: {}]   ;;  %s689_s6 = inlined_call_operand.hbm [shape: s32[1,16,128], index: 6, kind: output, shape index: {0}]   ;;  %s690_s7 = inlined_call_operand.hbm [shape: s32[1,16,128], index: 7, kind: output, shape index: {1}]  }
   0x1   :  { %14 = vsyncpa [#allocation3], 0 }
   0x2   :  { %15 = vsyncpa [#allocation8], 0 }
   0x3   :  { %16 = vsyncpa [#allocation11], 0 }
   0x4   :  { %17 = vsyncpa [#allocation4], 0 }
   0x5   :  { %18 = vsyncpa [#allocation15], 0  ;;  %s45_s26 = sshll.u32 %s685_s2, 4  ;;  %s507_s27 = smov [#allocation7]   ;;  %s46_s26 = int_to_ptr.hbm [resolvable:$true] %s45_s26 }
   0x6   :  { %s47_s28 = sshll.u32 %s507_s27, 4  ;;  %s71_s8 = sshll.u32 %s687_s4, 4  ;;  %s48_s28 = int_to_ptr.vmem [resolvable:$true] %s47_s28  ;;  %s72_s8 = int_to_ptr.hbm [resolvable:$true] %s71_s8 }
   0x7   :  { %s508_s9 = smov 128   ;;  %s509_s10 = smov 8  }
   0x8   :  { %53 = dma.hbm_to_vmem [thread:$0]  %s46_s26, 256, %s48_s28, [#allocation8], %s508_s9, %s508_s9, %s509_s10  }
   0x9   :  { %s510_s11 = smov [#allocation10]   ;;  %s24_s2 = sshll.u32 %s683_s0, 4  ;;  %s25_s2 = int_to_ptr.hbm [resolvable:$true] %s24_s2 }
   0xa   :  { %s73_s12 = sshll.u32 %s510_s11, 4  ;;  %s32_s16 = sshll.u32 %s684_s1, 4  ;;  %s74_s12 = int_to_ptr.vmem [resolvable:$true] %s73_s12  ;;  %s33_s16 = int_to_ptr.hbm [resolvable:$true] %s32_s16 }
   0xb   :  { %79 = dma.hbm_to_vmem [thread:$0]  %s72_s8, 256, %s74_s12, [#allocation11], %s508_s9, %s508_s9, %s509_s10  }
   0xc   :  { %s511_s17 = smov [#allocation2]   ;;  %s512_s18 = smov [#allocation6]  }
   0xd   :  { %27 = dma.hbm_to_smem %s25_s2, 16, %s511_s17, [#allocation5]  }
   0xe   :  { %s34_s19 = sshll.u32 %s512_s18, 4  ;;  %s58_s22 = sshll.u32 %s686_s3, 4  ;;  %s35_s19 = int_to_ptr.vmem [resolvable:$true] %s34_s19  ;;  %s59_s22 = int_to_ptr.hbm [resolvable:$true] %s58_s22 }
   0xf   :  { %40 = dma.hbm_to_vmem [thread:$0]  %s33_s16, 256, %s35_s19, [#allocation3], %s508_s9, %s508_s9, %s509_s10  }
  0x10   :  { %s84_s24 = sshll.u32 %s688_s5, 4  ;;  %s513_s1 = smov [#allocation9]   ;;  %s85_s24 = int_to_ptr.hbm [resolvable:$true] %s84_s24 }
  0x11   :  { %s60_s25 = sshll.u32 %s513_s1, 4  ;;  %s514_s26 = smov [#allocation12]   ;;  %s61_s25 = int_to_ptr.vmem [resolvable:$true] %s60_s25 }
  0x12   :  { %66 = dma.hbm_to_vmem [thread:$0]  %s59_s22, 256, %s61_s25, [#allocation8], %s508_s9, %s508_s9, %s509_s10  }
  0x13   :  { %s86_s3 = sshll.u32 %s514_s26, 4  ;;  %s87_s3 = int_to_ptr.vmem [resolvable:$true] %s86_s3 }
  0x14   :  { %92 = dma.hbm_to_vmem [thread:$0]  %s85_s24, 256, %s87_s3, [#allocation11], %s508_s9, %s508_s9, %s509_s10  }
  0x15   :  { %495 = dma.done.wait [#allocation5], 16  }
  0x16   :  { %496 = vsyncadd [#allocation5], 4294967280 }
  0x17   :  { %497 = dma.done.wait [#allocation3], 256  }
  0x18   :  { %498 = vsyncadd [#allocation3], 4294967040 }
  0x19   :  { %499 = dma.done.wait [#allocation8], 512  }
  0x1a   :  { %500 = vsyncadd [#allocation8], 4294966784 }
  0x1b   :  { %501 = dma.done.wait [#allocation11], 512  }
  0x1c   :  { %502 = vsyncadd [#allocation11], 4294966784 }
  0x1d   :  { %117 = sfence }
  0x1e   :  { %v593_v0 = vld [vmem:[#allocation7] sm:$0xff]  ;;  %v595_v1 = vld [vmem:[#allocation7 + $0x8] sm:$0xff]  ;;  %v597_v2 = vld [vmem:[#allocation9] sm:$0xff]  ;;  %v136_v3 = vlaneseq  ;;  %s599_s5 = sld [smem:[#allocation2]]  ;;  %v515_v6 = vmov 0.0   ;;  %s516_s14 = smov 1  }
  0x1f   :  { %v601_v4 = vld [vmem:[#allocation9 + $0x8] sm:$0xff]  ;;  %vm126_vm0 = vcmp.gt.s32.totalorder %v593_v0, 0  ;;  %vm127_vm1 = vcmp.gt.s32.totalorder %v595_v1, 0  ;;  %vm128_vm2 = vcmp.gt.s32.totalorder %v597_v2, 0  ;;  %s606_s27 = sld [smem:[#allocation2 + $0x3]]  ;;  %s517_s2 = smov 127  }
  0x20   :  { %vm129_vm3 = vcmp.gt.s32.totalorder %v601_v4, 0  ;;  %vm130_vm4 = vmand %vm126_vm0, %vm128_vm2  ;;  %v137_v5 = vshrl.u32 %v136_v3, 7  ;;  %s610_s28 = sld [smem:[#allocation2 + $0x6]]  ;;  %v140_v54 = vand.u32 127, %v136_v3  ;;  %vm226_vm11 = vcmp.lt.s32.totalorder %v593_v0, 0  ;;  %v232_v57 = vld [vmem:[#allocation10] sm:$0xff] }
  0x21   :  { %vm131_vm5 = vmand %vm127_vm1, %vm129_vm3  ;;  %v292_v7 = vsel %vm130_vm4, 1.0, %v515_v6  ;;  %s612_s29 = sld [smem:[#allocation2 + $0x2]]  ;;  %vm228_vm12 = vcmp.eq.s32.totalorder %v597_v2, 0  ;;  %vm234_vm15 = vcmp.gt.s32.totalorder %v232_v57, 0  ;;  %vm227_vm1 = vcmp.lt.s32.totalorder %v595_v1, 0  ;;  %s518_s4 = smov [#allocation13]  }
  0x22   :  { %v614_v8 = vsel %vm131_vm5, 1.0, %v515_v6  ;;  %v138_v9 = vadd.s32 8, %v137_v5  ;;  %vm142_vm6 = vcmp.ge.s32.totalorder %v137_v5, 1  ;;  %v148_v10 = vrot.slane %v292_v7, 7  ;;  %s616_s30 = sld [smem:[#allocation2 + $0x5]]  ;;  %vm230_vm14 = vmand %vm226_vm11, %vm228_vm12  ;;  %s256_s15 = sshll.u32 %s518_s4, 4  ;;  %s257_s15 = int_to_ptr.vmem [resolvable:$true] %s256_s15 }
  0x23   :  { %v149_v11 = vrot.slane %v614_v8, 7  ;;  %vm150_vm7 = vcmp.lt.s32.totalorder %v137_v5, 1  ;;  %v155_v12 = vrot.slane %v292_v7, 1  ;;  %v156_v13 = vrot.slane %v614_v8, 1  ;;  %s620_s8 = sld [smem:[#allocation2 + $0x8]]  ;;  %vm236_vm0 = vmand %vm230_vm14, %vm234_vm15  ;;  %s258_s18 = sshll.u32 %s689_s6, 4  ;;  %s259_s18 = int_to_ptr.hbm [resolvable:$true] %s258_s18 }
  0x24   :  { %vm157_vm8 = vcmp.lt.s32.totalorder %v137_v5, 7  ;;  %v171_v14 = vstv %s599_s5  ;;  %s623_s11 = sld [smem:[#allocation2 + $0x1]]  ;;  %vm145_vm9 = vcmp.le.s32.totalorder %v138_v9, 14  ;;  %v141_v55 = vand.u32 15, %v140_v54  ;;  %v122_v9 = vld [vmem:[#allocation12] sm:$0xff]  ;;  %s519_s19 = smov [#allocation14]  }
  0x25   :  { %v152_v15 = vsel %vm150_vm7, %v149_v11, %v148_v10  ;;  %v158_v16 = vsel %vm157_vm8, %v155_v12, %v156_v13  ;;  %v174_v17 = vstv %s606_s27  ;;  %s627_s12 = sld [smem:[#allocation2 + $0x4]]  ;;  %v159_v19 = vsel %vm157_vm8, %v156_v13, %v155_v12  ;;  %v233_v12 = vld [vmem:[#allocation10 + $0x8] sm:$0xff]  ;;  %v124_v13 = vld [vmem:[#allocation6] sm:$0xff]  ;;  %s269_s20 = sshll.u32 %s519_s19, 4  ;;  %s270_s20 = int_to_ptr.vmem [resolvable:$true] %s269_s20 }
  0x26   :  { %v153_v18 = vsel %vm142_vm6, %v152_v15, 0.0  ;;  %v175_v20 = vmul.f32 %v292_v7, %v174_v17  ;;  %s630_s13 = sld [smem:[#allocation2 + $0x7]]  ;;  %v179_v22 = vstv %s610_s28  ;;  %v151_v23 = vsel %vm150_vm7, %v148_v10, %v149_v11  ;;  %s271_s0 = sshll.u32 %s690_s7, 4  ;;  %s272_s0 = int_to_ptr.hbm [resolvable:$true] %s271_s0 }
  0x27   :  { %v172_v21 = vmul.f32 %v171_v14, %v153_v18  ;;  %v197_v24 = vstv %s612_s29  ;;  %v176_v25 = vmul.f32 %v614_v8, %v174_v17  ;;  %v180_v26 = vmul.f32 %v179_v22, %v158_v16 }
  0x28   :  { %v198_v27 = vmul.f32 %v197_v24, %v153_v18  ;;  %v173_v29 = vmul.f32 %v171_v14, %v151_v23  ;;  %v200_v30 = vstv %s616_s30  ;;  %v161_v32 = vsel %vm145_vm9, %v159_v19, 0.0 }
  0x29   :  { %v177_v28 = vadd.f32 %v175_v20, %v172_v21  ;;  %v205_v31 = vstv %s620_s8  ;;  %v201_v33 = vmul.f32 %v292_v7, %v200_v30  ;;  %v199_v36 = vmul.f32 %v197_v24, %v151_v23 }
  0x2a   :  { %v206_v34 = vmul.f32 %v205_v31, %v158_v16  ;;  %v184_v37 = vstv %s623_s11  ;;  %v202_v38 = vmul.f32 %v614_v8, %v200_v30  ;;  %v181_v42 = vmul.f32 %v179_v22, %v161_v32  ;;  %v123_v22 = vld [vmem:[#allocation12 + $0x8] sm:$0xff] }
  0x2b   :  { %v182_v35 = vadd.f32 %v180_v26, %v177_v28  ;;  %v203_v39 = vadd.f32 %v201_v33, %v198_v27  ;;  %v185_v40 = vmul.f32 %v184_v37, %v153_v18  ;;  %v187_v41 = vstv %s627_s12 }
  0x2c   :  { %v178_v43 = vadd.f32 %v176_v25, %v173_v29  ;;  %v188_v44 = vmul.f32 %v292_v7, %v187_v41  ;;  %v192_v45 = vstv %s630_s13  ;;  %v207_v49 = vmul.f32 %v205_v31, %v161_v32 }
  0x2d   :  { %210 = vrot.lane.b32.xlu0 %v182_v35, %s516_s14  ;;  %v208_v46 = vadd.f32 %v206_v34, %v203_v39  ;;  %v193_v47 = vmul.f32 %v192_v45, %v158_v16  ;;  %v204_v50 = vadd.f32 %v202_v38, %v199_v36  ;;  %vm644_vm10 = vcmp.ge.s32.totalorder %v141_v55, 1 }
  0x2e   :  { %v190_v48 = vadd.f32 %v188_v44, %v185_v40  ;;  %v183_v51 = vadd.f32 %v181_v42, %v178_v43  ;;  %v186_v58 = vmul.f32 %v184_v37, %v151_v23  ;;  %v189_v59 = vmul.f32 %v614_v8, %v187_v41 }
  0x2f   :  { %218 = vrot.lane.b32.xlu1 %v208_v46, %s517_s2  ;;  %v209_v53 = vadd.f32 %v207_v49, %v204_v50  ;;  %vm653_vm13 = vcmp.le.s32.totalorder %v141_v55, 14  ;;  %v194_v5 = vmul.f32 %v192_v45, %v161_v32  ;;  %v242_v10 = vsub.s32 0, %v593_v0 }
  0x30   :  { %v195_v52 = vadd.f32 %v193_v47, %v190_v48  ;;  %v191_v3 = vadd.f32 %v189_v59, %v186_v58  ;;  %vm229_vm2 = vcmp.eq.s32.totalorder %v601_v4, 0  ;;  %vm235_vm5 = vcmp.gt.s32.totalorder %v233_v12, 0 }
  0x31   :  { %vm231_vm4 = vmand %vm227_vm1, %vm229_vm2  ;;  %v243_v24 = vsub.s32 0, %v595_v1 }
  0x32   :  { %v196_v11 = vadd.f32 %v194_v5, %v191_v3  ;;  %vm237_vm6 = vmand %vm231_vm4, %vm235_vm5 }
  0x35   :  { %212 = vrot.lane.b32.xlu0 %v183_v51, %s516_s14 }
  0x37   :  { %220 = vrot.lane.b32.xlu1 %v209_v53, %s517_s2 }
  0x9f   :  { %v211_v60 = vpop.permute.xlu0 %210 }
  0xa0   :  { %v214_v61 = vsel %vm644_vm10, %v211_v60, 0.0 }
  0xa1   :  { %v216_v63 = vadd.f32 %v214_v61, %v195_v52  ;;  %v219_v6 = vpop.permute.xlu1 %218 }
  0xa2   :  { %v222_v7 = vsel %vm653_vm13, %v219_v6, 0.0 }
  0xa3   :  { %v224_v8 = vadd.f32 %v222_v7, %v216_v63 }
  0xa5   :  { %v238_v14 = vsel %vm236_vm0, %v224_v8, 0.0 }
  0xa6   :  { %vm240_vm3 = vcmp.lt.f32.partialorder %v122_v9, %v238_v14 }
  0xa7   :  { %v213_v15 = vpop.permute.xlu0 %212  ;;  %v244_v17 = vsel %vm240_vm3, %v242_v10, %v593_v0  ;;  %v248_v18 = vsel %vm240_vm3, %v124_v13, %v597_v2  ;;  %v125_v0 = vld [vmem:[#allocation6 + $0x8] sm:$0xff] }
  0xa8   :  { %v215_v16 = vsel %vm644_vm10, %v213_v15, 0.0  ;;  %246 = vst [vmem:[#allocation13] sm:$0xff] %v244_v17 }
  0xa9   :  { %v217_v19 = vadd.f32 %v215_v16, %v196_v11  ;;  %v221_v20 = vpop.permute.xlu1 %220  ;;  %250 = vst [vmem:[#allocation14] sm:$0xff] %v248_v18 }
  0xaa   :  { %v223_v21 = vsel %vm653_vm13, %v221_v20, 0.0 }
  0xab   :  { %v225_v23 = vadd.f32 %v223_v21, %v217_v19 }
  0xad   :  { %v239_v2 = vsel %vm237_vm6, %v225_v23, 0.0 }
  0xae   :  { %vm241_vm7 = vcmp.lt.f32.partialorder %v123_v22, %v239_v2 }
  0xaf   :  { %v245_v25 = vsel %vm241_vm7, %v243_v24, %v595_v1  ;;  %v249_v26 = vsel %vm241_vm7, %v125_v0, %v601_v4 }
  0xb0   :  { %247 = vst [vmem:[#allocation13 + $0x8] sm:$0xff] %v245_v25 }
  0xb1   :  { %264 = dma.vmem_to_hbm [thread:$0]  %s257_s15, 256, %s259_s18, [#allocation4], %s508_s9, %s508_s9, %s509_s10   ;;  %251 = vst [vmem:[#allocation14 + $0x8] sm:$0xff] %v249_v26 }
  0xb2   :  { %277 = dma.vmem_to_hbm [thread:$0]  %s270_s20, 256, %s272_s0, [#allocation15], %s508_s9, %s508_s9, %s509_s10  }
  0xb3   :  { %503 = dma.done.wait [#allocation4], 256  }
  0xb4   :  { %504 = vsyncadd [#allocation4], 4294967040 }
  0xb5   :  { %505 = dma.done.wait [#allocation15], 256  }
  0xb6   :  { %506 = vsyncadd [#allocation15], 4294967040 }
  0xb7   :  { %286 = vsyncpa [#allocation3], 1 }
  0xb8   :  { %287 = vsyncpa [#allocation8], 1 }
  0xb9   :  { %288 = vsyncpa [#allocation11], 1 }
  0xba   :  { %289 = vsyncpa [#allocation4], 1 }
  0xbb   :  { %290 = vsyncpa [#allocation15], 1 }
  0xbc   :  { %291 = vsyncpa [#allocation5], 1 }

</bundles_post_ra>
